<compile_context>
chip_gen: v6e
topology: v6e:2x2x1
jax: 0.10.0
libtpu: 0.0.40
codegen_flags: <defaults>
</compile_context>

<pallas_src>
import jax
import jax.numpy as jnp
from jax.experimental import pallas as pl
from jax.experimental.pallas import tpu as pltpu


# ----------------------------- budgeting helpers -----------------------------

def _vmem_capacity():
    try:
        return int(pltpu.get_tpu_info().vmem_capacity_bytes)
    except Exception:
        return 64 * 1024 * 1024        # conservative default (v7x per-TC VMEM)


def _working_set_bytes(block_elems, itemsize):
    # double-buffered x-in + out at input dtype, plus ~3 block-sized f32 temporaries
    return 2 * 2 * block_elems * itemsize + 3 * block_elems * 4


def _vmem_limit(need_bytes, vmem_cap):
    return int(max(16 * 1024 * 1024, min(0.85 * vmem_cap, 2 * need_bytes)))


def _pick_batch_block(B, E, T, itemsize, vmem_cap):
    """Largest divisor bB of B whose (bB, E, T) block fits the budget while still
    leaving >= min(B, 4) grid steps for pipeline overlap.  None => use two-pass path."""
    budget = min(int(0.55 * vmem_cap), 40 * 1024 * 1024)
    per_block_cap = 8 * 1024 * 1024     # ~85%+ of HBM roofline well before this
    min_steps = min(B, 4)
    best = None
    for d in range(1, B + 1):
        if B % d:
            continue
        blk = d * E * T
        if blk * itemsize > per_block_cap or _working_set_bytes(blk, itemsize) > budget:
            continue
        if B // d < min_steps:
            continue
        best = d
    return best


def _pick_time_tile(E, T, itemsize, vmem_cap):
    """Largest 128-multiple T tile whose (1, E, tT) block fits the budget."""
    budget = min(int(0.55 * vmem_cap), 40 * 1024 * 1024)
    per_block_cap = 8 * 1024 * 1024
    if T <= 128:
        return T
    tT = (T // 128) * 128
    while tT > 128 and (E * tT * itemsize > per_block_cap
                        or _working_set_bytes(E * tT, itemsize) > budget):
        tT -= 128
    return tT


def _batch_axis_semantics(n_steps):
    """Batch grid axis: CORE_PARALLEL on v7x-class parts (2 TensorCores/chip) so both
    cores get batch tiles; plain 'parallel' elsewhere (no-op on 1-TC v5e/v6e)."""
    try:
        kind = jax.devices()[0].device_kind.lower()
        if n_steps >= 2 and ("v7" in kind or "7x" in kind or "tpu7" in kind):
            return getattr(pltpu, "CORE_PARALLEL", "parallel")
    except Exception:
        pass
    return "parallel"


# ------------------------------- kernel bodies -------------------------------

def _conv_sigmoid_gate(w_ref, s, k_size):
    """sigmoid(k-tap zero-padded channel conv of s); taps read as scalars from SMEM.
    conv(avg) + conv(max) == conv(avg + max) because the conv is linear & bias-free."""
    pad = (k_size - 1) // 2
    rows, E = s.shape
    z = jnp.zeros((rows, pad), jnp.float32)
    sp = jnp.concatenate([z, s, z], axis=1)               # (rows, E + 2*pad)
    conv = w_ref[0] * sp[:, 0:E]
    for j in range(1, k_size):
        conv = conv + w_ref[j] * sp[:, j:j + E]
    return jax.nn.sigmoid(conv)


def _make_single_pass_kernel(k_size):
    def kernel(w_ref, len_ref, inv_ref, x_ref, o_ref):
        # w_ref:   (k,)        f32  SMEM conv taps
        # len_ref: (bB, 1, 1)  i32  valid lengths
        # inv_ref: (bB, 1, 1)  f32  1 / max(length, 1)
        # x_ref / o_ref: (bB, E, T) in input dtype (full, unpadded T)
        x = x_ref[...]
        bB, _, T = x.shape
        t_idx = jax.lax.broadcasted_iota(jnp.int32, (bB, 1, T), 2)
        L = len_ref[...]                                   # (bB, 1, 1)
        inv_l = inv_ref[...][:, :, 0]                      # (bB, 1)

        # length-masked average pool over time (f32 accumulation)
        avg = jnp.sum(jnp.where(t_idx < L, x.astype(jnp.float32), 0.0), axis=2) * inv_l
        # UNmasked max pool over the full (unpadded) time axis, as in the torch code
        mx = jnp.max(x, axis=2).astype(jnp.float32)

        gate = _conv_sigmoid_gate(w_ref, avg + mx, k_size).astype(x.dtype)   # (bB, E)
        o_ref[...] = x * gate[:, :, None]
    return kernel


def _make_reduce_kernel(k_size, t_total, t_tile):
    def kernel(w_ref, len_ref, inv_ref, x_ref, gate_ref, sum_acc, max_acc):
        j = pl.program_id(1)

        @pl.when(j == 0)
        def _():
            sum_acc[...] = jnp.zeros_like(sum_acc)
            max_acc[...] = jnp.full_like(max_acc, -jnp.inf)

        x = x_ref[...]                                     # (1, E, tT)
        xf = x.astype(jnp.float32)
        t_loc = jax.lax.broadcasted_iota(jnp.int32, (1, 1, t_tile), 2)
        t_glob = j * t_tile + t_loc
        in_bounds = t_glob < t_total                       # masks OOB tail of last tile
        L = len_ref[...]                                   # (1, 1, 1)

        sum_acc[...] += jnp.sum(jnp.where((t_glob < L) & in_bounds, xf, 0.0), axis=2)
        max_acc[...] = jnp.maximum(
            max_acc[...], jnp.max(jnp.where(in_bounds, xf, -jnp.inf), axis=2))

        @pl.when(j == pl.num_programs(1) - 1)
        def _():
            inv_l = inv_ref[...][:, :, 0]                  # (1, 1)
            s = sum_acc[...] * inv_l + max_acc[...]        # (1, E)
            gate_ref[...] = _conv_sigmoid_gate(w_ref, s, k_size)[:, None, :]
    return kernel


def _mul_kernel(gate_ref, x_ref, o_ref):
    x = x_ref[...]                                         # (1, E, tT)
    g = gate_ref[...][:, 0, :].astype(x.dtype)             # (1, E)
    o_ref[...] = x * g[:, :, None]


# --------------------------------- wrappers ----------------------------------

def _single_pass(x, len3, inv3, w_taps, k_size, bB, itemsize, vmem_cap, donate_x):
    B, E, T = x.shape
    steps = B // bB
    need = _working_set_bytes(bB * E * T, itemsize)
    return pl.pallas_call(
        _make_single_pass_kernel(k_size),
        out_shape=jax.ShapeDtypeStruct((B, E, T), x.dtype),
        grid_spec=pltpu.PrefetchScalarGridSpec(
            num_scalar_prefetch=0,
            grid=(steps,),
            in_specs=[
                pl.BlockSpec(memory_space=pltpu.MemorySpace.SMEM),   # conv taps (k,)
                pl.BlockSpec((bB, 1, 1), lambda i: (i, 0, 0)),       # lengths
                pl.BlockSpec((bB, 1, 1), lambda i: (i, 0, 0)),       # 1/length
                pl.BlockSpec((bB, E, T), lambda i: (i, 0, 0)),       # x (full E, T)
            ],
            out_specs=pl.BlockSpec((bB, E, T), lambda i: (i, 0, 0)),
        ),
        compiler_params=pltpu.CompilerParams(
            dimension_semantics=(_batch_axis_semantics(steps),),
            vmem_limit_bytes=_vmem_limit(need, vmem_cap),
        ),
        input_output_aliases=({3: 0} if donate_x else {}),
    )(w_taps, len3, inv3, x)


def _two_pass(x, len3, inv3, w_taps, k_size, itemsize, vmem_cap, donate_x):
    B, E, T = x.shape
    tT = _pick_time_tile(E, T, itemsize, vmem_cap)
    nT = pl.cdiv(T, tT)
    need = _working_set_bytes(E * tT, itemsize)
    batch_sem = _batch_axis_semantics(B)

    # pass 1: masked sum + max accumulated over T tiles -> sigmoid(conv) gate (B,1,E)
    gate = pl.pallas_call(
        _make_reduce_kernel(k_size, T, tT),
        out_shape=jax.ShapeDtypeStruct((B, 1, E), jnp.float32),
        grid_spec=pltpu.PrefetchScalarGridSpec(
            num_scalar_prefetch=0,
            grid=(B, nT),
            in_specs=[
                pl.BlockSpec(memory_space=pltpu.MemorySpace.SMEM),
                pl.BlockSpec((1, 1, 1), lambda b, j: (b, 0, 0)),
                pl.BlockSpec((1, 1, 1), lambda b, j: (b, 0, 0)),
                pl.BlockSpec((1, E, tT), lambda b, j: (b, 0, j)),
            ],
            out_specs=pl.BlockSpec((1, 1, E), lambda b, j: (b, 0, 0)),
            scratch_shapes=[pltpu.VMEM((1, E), jnp.float32),
                            pltpu.VMEM((1, E), jnp.float32)],
        ),
        compiler_params=pltpu.CompilerParams(
            dimension_semantics=(batch_sem, "arbitrary"),
            vmem_limit_bytes=_vmem_limit(need, vmem_cap),
        ),
    )(w_taps, len3, inv3, x)

    # pass 2: streaming elementwise gating
    return pl.pallas_call(
        _mul_kernel,
        out_shape=jax.ShapeDtypeStruct((B, E, T), x.dtype),
        grid_spec=pltpu.PrefetchScalarGridSpec(
            num_scalar_prefetch=0,
            grid=(B, nT),
            in_specs=[
                pl.BlockSpec((1, 1, E), lambda b, j: (b, 0, 0)),
                pl.BlockSpec((1, E, tT), lambda b, j: (b, 0, j)),
            ],
            out_specs=pl.BlockSpec((1, E, tT), lambda b, j: (b, 0, j)),
        ),
        compiler_params=pltpu.CompilerParams(
            dimension_semantics=(batch_sem, "parallel"),
            vmem_limit_bytes=_vmem_limit(need, vmem_cap),
        ),
        input_output_aliases=({1: 0} if donate_x else {}),
    )(gate, x)


def channel_attention(x, length, w_conv, *, donate_x=False, force_two_pass=False):
    B, E, T = x.shape
    k_size = int(w_conv.shape[0])
    itemsize = jnp.dtype(x.dtype).itemsize

    len3 = length.astype(jnp.int32).reshape(B, 1, 1)
    # length == 0 guarded with max(.,1) (reference would produce NaN/Inf there).
    inv3 = (1.0 / jnp.maximum(length, 1).astype(jnp.float32)).reshape(B, 1, 1)
    w_taps = w_conv.astype(jnp.float32).reshape(k_size)

    vmem_cap = _vmem_capacity()
    bB = None if force_two_pass else _pick_batch_block(B, E, T, itemsize, vmem_cap)

    if bB is None:
        return _two_pass(x, len3, inv3, w_taps, k_size, itemsize, vmem_cap, donate_x)
    return _single_pass(x, len3, inv3, w_taps, k_size, bB, itemsize, vmem_cap, donate_x)


# --------------------------------- reference ----------------------------------

def channel_attention_ref(x, length, w_conv):
    """Pure-JAX reference mirroring the PyTorch forward exactly."""
    B, E, T = x.shape
    t_idx = jnp.arange(T)[None, None, :]
    mask = (t_idx < length[:, None, None]).astype(x.dtype)
    y_avg = jnp.sum(x * mask, axis=2) / length[:, None].astype(x.dtype)   # (B, E)
    y_max = jnp.max(x, axis=2)                                            # (B, E)

    k = w_conv.shape[0]
    pad = (k - 1) // 2

    def conv_channel(y):  # (B, E), conv over channel axis, zero padding
        yp = jnp.pad(y, ((0, 0), (pad, pad)))
        return sum(w_conv[j] * yp[:, j:j + E] for j in range(k))

    gate = jax.nn.sigmoid(conv_channel(y_avg) + conv_channel(y_max))       # (B, E)
    return x * gate[:, :, None]


if __name__ == "__main__":
    key = jax.random.PRNGKey(0)
    kx, kw, kx2 = jax.random.split(key, 3)

    k_size = 5
    bound = 1.0 / jnp.sqrt(jnp.float32(k_size))
    w_conv = jax.random.uniform(kw, (k_size,), jnp.float32, -bound, bound)

    # --- small shape: single-pass streaming path ---
    B, E, T = 2, 16, 32
    x = jax.random.normal(kx, (B, E, T), dtype=jnp.float32)
    length = jnp.array([20, 32], dtype=jnp.int32)          # valid lengths per batch

    out = jax.block_until_ready(channel_attention(x, length, w_conv))
    ref = channel_attention_ref(x, length, w_conv)
    assert out.shape == (B, E, T)
    assert jnp.allclose(out, ref, atol=1e-5, rtol=1e-5), "single-pass mismatch vs reference"

    # --- larger T: force the T-tiled two-pass (v7x-oversize) path, incl. a partial tile ---
    B2, E2, T2 = 2, 16, 320
    x2 = jax.random.normal(kx2, (B2, E2, T2), dtype=jnp.float32)
    length2 = jnp.array([200, 320], dtype=jnp.int32)

    out2 = jax.block_until_ready(
        channel_attention(x2, length2, w_conv, force_two_pass=True))
    ref2 = channel_attention_ref(x2, length2, w_conv)
    assert out2.shape == (B2, E2, T2)
    assert jnp.allclose(out2, ref2, atol=1e-5, rtol=1e-5), "two-pass mismatch vs reference"

    print("KERNEL_OK")
</pallas_src>

<mosaic_0001>
module attributes {stable_mosaic.version = 11 : i64} {
  func.func @kernel(%arg0: i32, %arg1: memref<5xf32, #tpu.memory_space<smem>>, %arg2: memref<1x1x1xi32, #tpu.memory_space<vmem>>, %arg3: memref<1x1x1xf32, #tpu.memory_space<vmem>>, %arg4: memref<1x16x32xf32, #tpu.memory_space<vmem>>, %arg5: memref<1x16x32xf32, #tpu.memory_space<vmem>>) attributes {dimension_semantics = [#tpu.dimension_semantics<parallel>], iteration_bounds = array<i64: 2>, scalar_prefetch = 0 : i64, scratch_operands = 0 : i64, tpu.core_type = #tpu.core_type<tc>, window_params = [{transform_indices = @transform_0, window_bounds = array<i64: 5>}, {transform_indices = @transform_1, window_bounds = array<i64: 1, 1, 1>}, {transform_indices = @transform_2, window_bounds = array<i64: 1, 1, 1>}, {transform_indices = @transform_3, window_bounds = array<i64: 1, 16, 32>}, {transform_indices = @transform_4, window_bounds = array<i64: 1, 16, 32>}]} {
    %c0 = arith.constant 0 : index
    %c0_0 = arith.constant 0 : index
    %c0_1 = arith.constant 0 : index
    %0 = vector.load %arg4[%c0, %c0_0, %c0_1] : memref<1x16x32xf32, #tpu.memory_space<vmem>>, vector<1x16x32xf32>
    %1 = tpu.iota {dimensions = array<i32: 2>} : vector<1x1x32xi32>
    %c0_2 = arith.constant 0 : index
    %c0_3 = arith.constant 0 : index
    %c0_4 = arith.constant 0 : index
    %2 = vector.load %arg2[%c0_2, %c0_3, %c0_4] : memref<1x1x1xi32, #tpu.memory_space<vmem>>, vector<1x1x1xi32>
    %c0_5 = arith.constant 0 : index
    %c0_6 = arith.constant 0 : index
    %c0_7 = arith.constant 0 : index
    %3 = vector.load %arg3[%c0_5, %c0_6, %c0_7] : memref<1x1x1xf32, #tpu.memory_space<vmem>>, vector<1x1x1xf32>
    %4 = vector.shape_cast %3 : vector<1x1x1xf32> to vector<1x1xf32>
    %5 = vector.broadcast %2 : vector<1x1x1xi32> to vector<1x1x32xi32>
    %6 = arith.cmpi slt, %1, %5 : vector<1x1x32xi32>
    %cst = arith.constant 0.000000e+00 : f32
    %7 = vector.shape_cast %6 : vector<1x1x32xi1> to vector<1x1x32xi1>
    %8 = vector.broadcast %7 : vector<1x1x32xi1> to vector<1x16x32xi1>
    %9 = vector.broadcast %cst : f32 to vector<1x16x32xf32>
    %10 = arith.select %8, %0, %9 : vector<1x16x32xi1>, vector<1x16x32xf32>
    %cst_8 = arith.constant dense<0.000000e+00> : vector<1x16xf32>
    %11 = vector.multi_reduction <add>, %10, %cst_8 [2] : vector<1x16x32xf32> to vector<1x16xf32>
    %12 = vector.broadcast %4 : vector<1x1xf32> to vector<1x16xf32>
    %13 = arith.mulf %11, %12 : vector<1x16xf32>
    %cst_9 = arith.constant dense<0xFF800000> : vector<1x16xf32>
    %14 = vector.multi_reduction <maximumf>, %0, %cst_9 [2] : vector<1x16x32xf32> to vector<1x16xf32>
    %15 = arith.addf %13, %14 : vector<1x16xf32>
    %cst_10 = arith.constant 0.000000e+00 : f32
    %16 = vector.broadcast %cst_10 : f32 to vector<1x2xf32>
    %17 = tpu.concatenate %16, %15, %16 in 1 : vector<1x2xf32>, vector<1x16xf32>, vector<1x2xf32> -> vector<1x20xf32>
    %c0_11 = arith.constant 0 : index
    %18 = memref.load %arg1[%c0_11] : memref<5xf32, #tpu.memory_space<smem>>
    %19 = vector.extract_strided_slice %17 {offsets = [0, 0], sizes = [1, 16], strides = [1, 1]} : vector<1x20xf32> to vector<1x16xf32>
    %20 = vector.broadcast %18 : f32 to vector<1x16xf32>
    %21 = arith.mulf %20, %19 : vector<1x16xf32>
    %c1 = arith.constant 1 : index
    %22 = memref.load %arg1[%c1] : memref<5xf32, #tpu.memory_space<smem>>
    %23 = vector.extract_strided_slice %17 {offsets = [0, 1], sizes = [1, 16], strides = [1, 1]} : vector<1x20xf32> to vector<1x16xf32>
    %24 = vector.broadcast %22 : f32 to vector<1x16xf32>
    %25 = arith.mulf %24, %23 : vector<1x16xf32>
    %26 = arith.addf %21, %25 : vector<1x16xf32>
    %c2 = arith.constant 2 : index
    %27 = memref.load %arg1[%c2] : memref<5xf32, #tpu.memory_space<smem>>
    %28 = vector.extract_strided_slice %17 {offsets = [0, 2], sizes = [1, 16], strides = [1, 1]} : vector<1x20xf32> to vector<1x16xf32>
    %29 = vector.broadcast %27 : f32 to vector<1x16xf32>
    %30 = arith.mulf %29, %28 : vector<1x16xf32>
    %31 = arith.addf %26, %30 : vector<1x16xf32>
    %c3 = arith.constant 3 : index
    %32 = memref.load %arg1[%c3] : memref<5xf32, #tpu.memory_space<smem>>
    %33 = vector.extract_strided_slice %17 {offsets = [0, 3], sizes = [1, 16], strides = [1, 1]} : vector<1x20xf32> to vector<1x16xf32>
    %34 = vector.broadcast %32 : f32 to vector<1x16xf32>
    %35 = arith.mulf %34, %33 : vector<1x16xf32>
    %36 = arith.addf %31, %35 : vector<1x16xf32>
    %c4 = arith.constant 4 : index
    %37 = memref.load %arg1[%c4] : memref<5xf32, #tpu.memory_space<smem>>
    %38 = vector.extract_strided_slice %17 {offsets = [0, 4], sizes = [1, 16], strides = [1, 1]} : vector<1x20xf32> to vector<1x16xf32>
    %39 = vector.broadcast %37 : f32 to vector<1x16xf32>
    %40 = arith.mulf %39, %38 : vector<1x16xf32>
    %41 = arith.addf %36, %40 : vector<1x16xf32>
    %42 = arith.negf %41 : vector<1x16xf32>
    %43 = math.exp %42 : vector<1x16xf32>
    %cst_12 = arith.constant 1.000000e+00 : f32
    %44 = vector.broadcast %cst_12 : f32 to vector<1x16xf32>
    %45 = arith.addf %44, %43 : vector<1x16xf32>
    %46 = arith.divf %44, %45 : vector<1x16xf32>
    %47 = vector.shape_cast %46 : vector<1x16xf32> to vector<1x16x1xf32>
    %48 = vector.broadcast %47 : vector<1x16x1xf32> to vector<1x16x32xf32>
    %49 = arith.mulf %0, %48 : vector<1x16x32xf32>
    %c0_13 = arith.constant 0 : index
    %c0_14 = arith.constant 0 : index
    %c0_15 = arith.constant 0 : index
    %50 = vector.load %arg5[%c0_13, %c0_14, %c0_15] : memref<1x16x32xf32, #tpu.memory_space<vmem>>, vector<1x16x32xf32>
    tpu.vector_store %arg5[%c0_13, %c0_14, %c0_15], %49 {strides = array<i32>} : memref<1x16x32xf32, #tpu.memory_space<vmem>>, vector<1x16x32xf32>,
    return
  }
  func.func @transform_0(%arg0: i32) -> i32 {
    %c0_i32 = arith.constant 0 : i32
    %c0_i32_0 = arith.constant 0 : i32
    return %c0_i32 : i32
  }
  func.func @transform_1(%arg0: i32) -> (i32, i32, i32) {
    %c0_i32 = arith.constant 0 : i32
    %c0_i32_0 = arith.constant 0 : i32
    %c0_i32_1 = arith.constant 0 : i32
    return %arg0, %c0_i32, %c0_i32_0 : i32, i32, i32
  }
  func.func @transform_2(%arg0: i32) -> (i32, i32, i32) {
    %c0_i32 = arith.constant 0 : i32
    %c0_i32_0 = arith.constant 0 : i32
    %c0_i32_1 = arith.constant 0 : i32
    return %arg0, %c0_i32, %c0_i32_0 : i32, i32, i32
  }
  func.func @transform_3(%arg0: i32) -> (i32, i32, i32) {
    %c0_i32 = arith.constant 0 : i32
    %c0_i32_0 = arith.constant 0 : i32
    %c0_i32_1 = arith.constant 0 : i32
    return %arg0, %c0_i32, %c0_i32_0 : i32, i32, i32
  }
  func.func @transform_4(%arg0: i32) -> (i32, i32, i32) {
    %c0_i32 = arith.constant 0 : i32
    %c0_i32_0 = arith.constant 0 : i32
    %c0_i32_1 = arith.constant 0 : i32
    return %arg0, %c0_i32, %c0_i32_0 : i32, i32, i32
  }
}

</mosaic_0001>

<bundles_post_ra>
// kernel: tpu_custom_call.1
= control target key start
LH: loop header
LB: loop body
LE: loop exit
PB: predicated region body
PF: predicated region fallthrough
CT: control target
= control target key end

     0   :  { %9 = vsyncpa [#allocation5], 0  ;;  %s953_s0 = inlined_call_operand.vmem [shape: f32[5], index: 0, kind: input, shape index: {}]   ;;  %s954_s1 = inlined_call_operand.vmem [shape: s32[2,1,1], index: 1, kind: input, shape index: {}]   ;;  %s955_s2 = inlined_call_operand.vmem [shape: f32[2,1,1], index: 2, kind: input, shape index: {}]   ;;  %s956_s3 = inlined_call_operand.hbm [shape: f32[2,16,32], index: 3, kind: input, shape index: {}]   ;;  %s957_s4 = inlined_call_operand.hbm [shape: f32[2,16,32], index: 4, kind: output, shape index: {}]  }
   0x1   :  { %10 = vsyncpa [#allocation3], 0 }
   0x2   :  { %12 = vsyncpa [#allocation3 + $0x1], 0 }
   0x3   :  { %13 = vsyncpa [#allocation4], 0 }
   0x4   :  { %15 = vsyncpa [#allocation4 + $0x1], 0  ;;  %s739_s15 = smov 0   ;;  %s741_s16 = smov 0  }
   0x5   :  { %s743_s17 = smov 0   ;;  %s745_s18 = smov 0  }
   0x6 LB: > { %s760_s19 = sadd.s32 4294967295, %s700_s18   ;;  %s494_s20 = sadd.s32 4294967294, %s700_s18   ;;  %s700_s18 = sphi %s745_s18, %s979_s18   ;;  %s696_s17 = sphi %s743_s17, %s978_s17   ;;  %s692_s16 = sphi %s741_s16, %s977_s16   ;;  %s688_s15 = sphi %s739_s15, %s976_s15  }
   0x7   : > { %s764_s21 = sadd.s32 1, %s700_s18   ;;  %s101_s22 = sadd.s32 1, %s696_s17 }
   0x8   : > { %s98_s23 = ssub.s32 %s700_s18, %s764_s21  ;;  %p108_p0 = scmp.ne.s32.totalorder %s696_s17, %s692_s16 }
   0x9   : > { %p99_p1 = scmp.eq.s32.totalorder %s98_s23, 0  ;;  %p109_p2 = scmp.eq.s32.totalorder %s700_s18, 0 }
   0xa   : > { %p114_p3 = scmp.ne.s32.totalorder %s692_s16, %s688_s15  ;;  %p959_p4 = scmp.eq.s32.totalorder %s760_s19, 0 }
   0xb   : > { %s776_s24 = scalar_select %p99_p1, %s696_s17, %s101_s22  }
   0xc   : > { %p778_p5 = por %p109_p2, %p108_p0  ;;  %p784_p6 = por %p959_p4, %p114_p3 }
   0xd   : > { %p138_p7 = scmp.eq.s32.totalorder %s760_s19, 1  ;;  %p144_p8 = scmp.eq.s32.totalorder %s494_s20, 1 }
   0xe   : > { %s963_s26 = scalar_select %p784_p6, 1, 0 }
   0xf   : > { %p495_p9 = scmp.ge.s32.totalorder %s700_s18, 1  ;;  %p151_p10 = scmp.lt.s32.totalorder %s700_s18, 3 }
  0x10   : > { %p791_p11 = por %p138_p7, %p108_p0  ;;  %p795_p12 = por %p144_p8, %p114_p3 }
  0x11   : > { %p799_p13 = pnand %p495_p9, %p151_p10  ;;  %s164_s6 = sshll.u32 %s953_s0, 4  ;;  %s165_s6 = int_to_ptr.vmem [resolvable:$true] %s164_s6 }
  0x12   : > { %s964_s27 = scalar_select %p791_p11, 1, 0 }
  0x13   : > { %s965_s28 = scalar_select %p795_p12, 1, 0 }
  0x14   : > { %s966_s29 = scalar_select %p799_p13, 1, 0 }
  0x15   : > { %p525_p1 = pneg %p799_p13  ;;  %p538_p2 = scmp.lt.s32.totalorder %s700_s18, 2 }
  0x16   : > { %s187_s8 = sand.u32 1, %s696_s17   ;;  %s589_s11 = scalar_lea.vmem %s165_s6, 16 }
  0x17   : > { %p812_p7 = pnand %p525_p1, %p959_p4  ;;  %p819_p3 = pnand %p538_p2, %p778_p5 }
  0x18   : > { %s498_s10 = sshll.u32 %s187_s8, 4  ;;  %p590_p8 = scmp.ne.s32.totalorder %s165_s6, %s589_s11 }
  0x19   : > { %p591_p9 = pneg %p812_p7  ;;  %p597_p12 = scmp.lt.s32.totalorder %s165_s6, %s165_s6 }
  0x1a   : > { %p598_p11 = scmp.lt.s32.totalorder %s589_s11, %s589_s11 }
  0x1b   : > { %p592_p10 = pnand %p591_p9, %p590_p8 }
  0x1c   : > { %p599_p1 = por %p598_p11, %p597_p12 }
  0x1d   : > { %p593_p0 = pneg %p592_p10 }
  0x1f   : > { %p600_p4 = pnand %p599_p1, %p593_p0 }
  0x21   : > { %603 = shalt.err (!%p600_p4)
}
  0x22   : > { %s702_s12 = smov [#allocation2]   ;;  %s515_s13 = sshll.u32 %s700_s18, 8 }
  0x23   : > { %528 = dma.vmem_to_smem (!%p812_p7), %s165_s6, 16, %s702_s12, [#allocation5]  }
  0x24   : > { %s191_s14 = scalar_lea.vmem [#allocation6], %s498_s10  ;;  %s831_s25 = scalar_lea.hbm %s956_s3, %s515_s13 }
  0x25   : > { %s198_s20 = sshll.u32 %s191_s14, 4  ;;  %s835_s30 = scalar_lea.sflag [#allocation3], %s187_s8  ;;  %s833_s20 = int_to_ptr.vmem [resolvable:$true] %s198_s20 }
  0x26   : > { %s604_s5 = scalar_lea.hbm %s831_s25, 256  ;;  %p606_p5 = pneg %p819_p3 }
  0x27   : > { %p605_p4 = scmp.ne.s32.totalorder %s831_s25, %s604_s5  ;;  %s609_s10 = scalar_lea.hbm %s956_s3, 512 }
  0x28   : > { %p610_p0 = scmp.lt.s32.totalorder %s831_s25, %s956_s3  ;;  %p611_p2 = scmp.lt.s32.totalorder %s609_s10, %s604_s5 }
  0x29   : > { %p607_p11 = pnand %p606_p5, %p605_p4 }
  0x2a   : > { %p612_p7 = por %p611_p2, %p610_p0 }
  0x2b   : > { %p608_p12 = pneg %p607_p11 }
  0x2d   : > { %p613_p8 = pnand %p612_p7, %p608_p12 }
  0x2f   : > { %616 = shalt.err (!%p613_p8)
}
  0x30   : > { %s617_s8 = scalar_lea.vmem %s833_s20, 256  ;;  %s703_s13 = smov [#allocation6]  }
  0x31   : > { %p618_p9 = scmp.ne.s32.totalorder %s833_s20, %s617_s8  ;;  %s622_s14 = sshll.u32 %s703_s13, 4  ;;  %s623_s14 = int_to_ptr.vmem [resolvable:$false] %s622_s14 }
  0x32   : > { %s624_s22 = scalar_lea.vmem %s623_s14, 512  ;;  %p625_p4 = scmp.lt.s32.totalorder %s833_s20, %s623_s14 }
  0x33   : > { %p620_p10 = pnand %p618_p9, %p606_p5  ;;  %p626_p11 = scmp.lt.s32.totalorder %s624_s22, %s617_s8 }
  0x35   : > { %p621_p1 = pneg %p620_p10  ;;  %p627_p6 = por %p626_p11, %p625_p4 }
  0x37   : > { %p628_p13 = pnand %p627_p6, %p621_p1 }
  0x39   : > { %631 = shalt.err (!%p628_p13)
}
  0x3a   : > { %s704_s23 = smov 128   ;;  %s705_s5 = smov 8  }
  0x3b   : > { %532 = dma.hbm_to_vmem [thread:$0]  (!%p819_p3), %s831_s25, 256, %s833_s20, %s835_s30, %s704_s23, %s704_s23, %s705_s5  }
  0x3c   : > { %p969_p5 = scmp.ne.s32.totalorder %s966_s29, 0 }
  0x3d   : > { %p970_p12 = scmp.eq.s32.totalorder (!%p969_p5), %s760_s19, 0 }
  0x3e   : > { %210 = sbr.rel (%p969_p5) target bundleno = 658 (0x292), region = 36 }
  0x43   : > { %675 = dma.done.wait (%p970_p12), [#allocation5], 16   ;;  %p971_p0 = pmov %p970_p12 }
  0x44   : > { %s863_s6 = sand.u32 1, %s692_s16   ;;  %p972_p6 = scmp.ne.s32.totalorder %s963_s26, 0 }
  0x45   : > { %677 = vsyncadd (%p971_p0), [#allocation5], 4294967280  ;;  %s503_s7 = sshll.u32 %s863_s6, 4  ;;  %s217_s10 = scalar_lea.sflag [#allocation3], %s863_s6 }
  0x46   : > { %s220_s9 = scalar_lea.vmem [#allocation6], %s503_s7 }
  0x47   : > { %679 = dma.done.wait (%p972_p6), %s217_s10, 256  }
  0x48   : > { %681 = vsyncadd (%p972_p6), %s217_s10, 4294967040 }
  0x49   : > { %225 = sfence }
  0x4a   : > { %p252_p13 = scmp.lt.s32.totalorder %s760_s19, 1  ;;  %v874_v0 = vld [vmem:[%s220_s9] sm:$0xff]  ;;  %vm276_vm0 = vcmask 261120   ;;  %v706_v1 = vmov 0   ;;  %v878_v3 = vld [vmem:[%s220_s9 + $0x8] sm:$0xff]  ;;  %v260_v6 = vlaneseq  ;;  %s507_s8 = sld [smem:[#allocation2 + $0x3]] }
  0x4b   : > { %583 = vset.pattern.permute.xlu0 %v706_v1  ;;  %v294_v2 = vsel %vm276_vm0, %v874_v0, -inf  ;;  %584 = vset.pattern.permute.xlu1 %v706_v1  ;;  %v297_v4 = vsel %vm276_vm0, %v878_v3, -inf  ;;  %s505_s13 = sld [smem:[#allocation2 + $0x1]]  ;;  %vm314_vm2 = vcmask 146512   ;;  %vm317_vm3 = vcmask 15360   ;;  %s707_s23 = smov 125  }
  0x4c   : > { %s253_s29 = scalar_select %p252_p13, %s760_s19, 1  ;;  %295 = vmax.xlane.f32.xlu1 %v294_v2  ;;  %v268_v7 = vshrl.u32 %v260_v6, 7  ;;  %v261_v9 = vand.u32 127, %v260_v6  ;;  %vm319_vm4 = vcmask 146432  }
  0x4d   : > { %s506_s14 = sld [smem:[#allocation2 + $0x2]]  ;;  %s708_s5 = smov 127  }
  0x4e   : > { %s254_s25 = scalar_lea.vmem %s954_s1, %s253_s29  ;;  %v886_v8 = vsub.s32 0, %v268_v7  ;;  %s257_s12 = scalar_lea.vmem %s955_s2, %s253_s29  ;;  %v304_v20 = vadd.s32 4294967294, %v261_v9  ;;  %v309_v21 = vadd.s32 4294967286, %v261_v9 }
  0x4f   : > { %v262_v5 = vld [vmem:[%s254_s25] sm:$0x1]  ;;  %s508_s22 = sld [smem:[#allocation2 + $0x4]]  ;;  %s709_s10 = smov 126  }
  0x50   : > { %265 = vperm.xlu0 %583, %v262_v5   ;;  %298 = vmax.xlane.f32.xlu1 %v297_v4  ;;  %v263_v16 = vld [vmem:[%s257_s12] sm:$0x1]  ;;  %v307_v25 = vsub.s32 %v304_v20, %v268_v7  ;;  %v312_v26 = vsub.s32 %v309_v21, %v268_v7  ;;  %v341_v34 = vstv %s507_s8  ;;  %s710_s9 = smov 124   ;;  %s321_s29 = sld [smem:[#allocation2]] }
  0x51   : > { %v325_v35 = vstv %s505_s13  ;;  %s251_s26 = scalar_lea.vmem [#allocation7], %s503_s7  ;;  %s516_s25 = sshll.u32 %s760_s19, 8 }
  0x52   : > { %s391_s20 = sshll.u32 %s251_s26, 4  ;;  %s908_s12 = scalar_lea.hbm %s957_s4, %s516_s25  ;;  %s903_s20 = int_to_ptr.vmem [resolvable:$true] %s391_s20 }
  0x53   : > { %v333_v40 = vstv %s506_s14  ;;  %s378_s7 = scalar_lea.sflag [#allocation4], %s863_s6  ;;  %s632_s8 = scalar_lea.vmem %s903_s20, 256 }
  0x54   : > { %p633_p3 = scmp.ne.s32.totalorder %s903_s20, %s632_s8  ;;  %p973_p2 = scmp.ne.s32.totalorder %s964_s27, 0 }
  0x55   : > { %v349_v42 = vstv %s508_s22  ;;  %s711_s19 = smov [#allocation7]  }
  0x56   : > { %v322_v44 = vstv %s321_s29  ;;  %p634_p7 = pnand %p633_p3, %p973_p2  ;;  %s636_s13 = sshll.u32 %s711_s19, 4  ;;  %s637_s13 = int_to_ptr.vmem [resolvable:$false] %s636_s13 }
  0x57   : > { %s638_s14 = scalar_lea.vmem %s637_s13, 512  ;;  %p639_p9 = scmp.lt.s32.totalorder %s903_s20, %s637_s13 }
  0x58   : > { %p635_p8 = pneg %p634_p7  ;;  %p640_p10 = scmp.lt.s32.totalorder %s638_s14, %s632_s8 }
  0x5a   : > { %p641_p1 = por %p640_p10, %p639_p9 }
  0x5c   : > { %p642_p4 = pnand %p641_p1, %p635_p8 }
  0xcb   : > { %v266_v10 = vpop.permute.xlu0 %265 }
  0xcc   : > { %v270_v11 = vrot.slane %v266_v10, %v886_v8 }
  0xce   : > { %vm271_vm1 = vcmp.lt.s32.totalorder %v261_v9, %v270_v11 }
  0xcf   : > { %v275_v12 = vsel %vm271_vm1, %v878_v3, 0.0  ;;  %v274_v13 = vsel %vm271_vm1, %v874_v0, 0.0 }
  0xd0   : > { %v280_v14 = vsel %vm276_vm0, %v275_v12, 0.0  ;;  %v277_v15 = vsel %vm276_vm0, %v274_v13, 0.0 }
  0xd1   : > { %281 = vadd.xlane.f32.xlu1 %v280_v14  ;;  %278 = vadd.xlane.f32.xlu0 %v277_v15 }
  0xd5   : > { %v296_v17 = vpop.xlane.xlu1 %295 }
  0xd9   : > { %v299_v18 = vpop.xlane.xlu1 %298 }
  0xe2   : > { %285 = vperm.xlu1 %584, %v263_v16  }
 0x15a   : > { %v282_v19 = vpop.xlane.xlu1 %281  ;;  %v279_v24 = vpop.xlane.xlu0 %278 }
 0x15e   : > { %v286_v22 = vpop.permute.xlu1 %285 }
 0x15f   : > { %v291_v23 = vrot.slane %v286_v22, %v886_v8 }
 0x161   : > { %v292_v27 = vmul.f32 %v291_v23, %v279_v24  ;;  %v293_v28 = vmul.f32 %v291_v23, %v282_v19 }
 0x163   : > { %v300_v29 = vadd.f32 %v296_v17, %v292_v27  ;;  %v301_v30 = vadd.f32 %v299_v18, %v293_v28 }
 0x165   : > { %v308_v31 = vrot.slane %v300_v29, %v307_v25  ;;  %v313_v32 = vrot.slane %v301_v30, %v312_v26 }
 0x167   : > { %v315_v33 = vsel %vm314_vm2, %v313_v32, %v308_v31 }
 0x168   : > { %v318_v36 = vsel %vm317_vm3, 0.0, %v315_v33 }
 0x169   : > { %v320_v37 = vsel %vm319_vm4, %v318_v36, 0.0 }
 0x16a   : > { %v342_v38 = vmul.f32 %v341_v34, %v320_v37  ;;  %v326_v39 = vmul.f32 %v325_v35, %v320_v37  ;;  %v334_v41 = vmul.f32 %v333_v40, %v320_v37  ;;  %v350_v43 = vmul.f32 %v349_v42, %v320_v37 }
 0x16b   : > { %v323_v46 = vmul.f32 %v322_v44, %v320_v37 }
 0x16c   : > { %344 = vrot.lane.b32.xlu0 %v342_v38, %s707_s23  ;;  %328 = vrot.lane.b32.xlu1 %v326_v39, %s708_s5 }
 0x170   : > { %336 = vrot.lane.b32.xlu1 %v334_v41, %s709_s10 }
 0x174   : > { %352 = vrot.lane.b32.xlu1 %v350_v43, %s710_s9 }
 0x1de   : > { %v329_v45 = vpop.permute.xlu1 %328  ;;  %v345_v50 = vpop.permute.xlu0 %344 }
 0x1df   : > { %v331_v47 = vadd.f32 %v329_v45, %v323_v46 }
 0x1e2   : > { %v337_v48 = vpop.permute.xlu1 %336 }
 0x1e3   : > { %v339_v49 = vadd.f32 %v337_v48, %v331_v47 }
 0x1e5   : > { %v347_v51 = vadd.f32 %v345_v50, %v339_v49 }
 0x1e6   : > { %v353_v52 = vpop.permute.xlu1 %352 }
 0x1e7   : > { %v355_v53 = vadd.f32 %v353_v52, %v347_v51 }
 0x1e9   : > { %v509_v54 = vmul.f32 -1.442695, %v355_v53 }
 0x1eb   : > { %585 = vpow2.f32 %v509_v54 }
 0x1f8   : > { %v586_v55 = vpop.eup %585 }
 0x1f9   : > { %v359_v56 = vadd.f32 1.0, %v586_v55 }
 0x1fb   : > { %587 = vrcp.f32 %v359_v56 }
 0x208   : > { %v588_v57 = vpop.eup %587 }
 0x209   : > { %v365_v58 = vrot.slane %v588_v57, %v886_v8 }
 0x20b   : > { %367 = vbcast.lane.b32.xlu1 %v365_v58, 256 }
 0x20f   : > { %371 = vbcast.lane.b32.xlu1 %v365_v58, 264 }
 0x27d   : > { %v368_v59 = vpop.permute.xlu1 %367 }
 0x27e   : > { %v373_v60 = vmul.f32 %v368_v59, %v874_v0 }
 0x280   : > { %375 = vst.msk [vmem:[%s251_s26] sm:$0xff] %vm276_vm0, %v373_v60 }
 0x281   : > { %v372_v61 = vpop.permute.xlu1 %371 }
 0x282   : > { %v374_v62 = vmul.f32 %v372_v61, %v878_v3 }
 0x284   : > { %376 = vst.msk [vmem:[%s251_s26 + $0x8] sm:$0xff] %vm276_vm0, %v374_v62 }
 0x285   : > { %645 = shalt.err (!%p642_p4)
}
 0x286   : > { %s646_s22 = scalar_lea.hbm %s908_s12, 256  ;;  %s650_s10 = scalar_lea.hbm %s957_s4, 512 }
 0x287   : > { %p647_p11 = scmp.ne.s32.totalorder %s908_s12, %s646_s22  ;;  %p651_p0 = scmp.lt.s32.totalorder %s908_s12, %s957_s4 }
 0x288   : > { %p652_p6 = scmp.lt.s32.totalorder %s650_s10, %s646_s22 }
 0x289   : > { %p648_p5 = pnand %p647_p11, %p973_p2 }
 0x28a   : > { %p653_p13 = por %p652_p6, %p651_p0 }
 0x28b   : > { %p649_p12 = pneg %p648_p5 }
 0x28d   : > { %p654_p3 = pnand %p653_p13, %p649_p12 }
 0x28f   : > { %657 = shalt.err (!%p654_p3)
}
 0x290   : > { %s712_s26 = smov 128   ;;  %s713_s25 = smov 8  }
 0x291   : > { %523 = dma.vmem_to_hbm [thread:$0]  (%p973_p2), %s903_s20, 256, %s908_s12, %s378_s7, %s712_s26, %s712_s26, %s713_s25  }
 0x292 PF: > { %s406_s30 = sand.u32 1, %s688_s15   ;;  %p974_p7 = scmp.ne.s32.totalorder %s965_s28, 0 }
 0x293   : > { %p975_p8 = scmp.ge.s32.totalorder %s700_s18, 2  ;;  %s407_s11 = scalar_lea.sflag [#allocation4], %s406_s30 }
 0x295   : > { %p534_p9 = pnand %p975_p8, %p974_p7 }
 0x297   : > { %p535_p10 = pneg %p534_p9 }
 0x299   : > { %683 = dma.done.wait (%p535_p10), %s407_s11, 256  }
 0x29a   : > { %685 = vsyncadd (%p535_p10), %s407_s11, 4294967040  ;;  %p18_p1 = scmp.ge.s32.totalorder %s764_s21, 4   ;;  %s976_s15 = smov %s692_s16 }
 0x29b   : > { %s977_s16 = smov %s696_s17  ;;  %s978_s17 = smov %s776_s24 }
 0x29c   : > { %s979_s18 = smov %s764_s21  ;;  %20 = sbr.rel (!%p18_p1) target bundleno = 6 (0x6), region = 92 }
 0x2a1   :  { %412 = vsyncpa [#allocation3], 1 }
 0x2a2   :  { %414 = vsyncpa [#allocation3 + $0x1], 1 }
 0x2a3   :  { %415 = vsyncpa [#allocation4], 1 }
 0x2a4   :  { %417 = vsyncpa [#allocation4 + $0x1], 1 }
 0x2a5   :  { %418 = vsyncpa [#allocation5], 1 }
 0x2a6   :  { %420 = vsyncpa [#allocation5 + $0x1], 1 }

</bundles_post_ra>
